<compile_context>
chip_gen: v6e
topology: v6e:2x2x1
jax: 0.10.0
libtpu: 0.0.40
codegen_flags: <defaults>
</compile_context>

<pallas_src>
import jax
import jax.numpy as jnp
from jax.experimental import pallas as pl
from jax.experimental.pallas import tpu as pltpu

LANE = 128           # vreg lane width: feature dims are zero-padded to a multiple of this
SUBLANE_ALIGN = 16   # batch-tile alignment (covers f32 (8,128) and bf16 (16,128) tiling)


def _round_up(n, m):
    return ((n + m - 1) // m) * m


def _pad_to(a, shape):
    return jnp.pad(a, [(0, s - d) for d, s in zip(a.shape, shape)])


def mlp_kernel(x_ref, w1_ref, b1_ref, w2_ref, b2_ref, w3_ref, b3_ref, o_ref):
    # Whole forward pass fused in VMEM: 3 MXU matmuls (bf16 in, f32 acc) + VPU/EUP epilogue.
    x = x_ref[...]                                          # (tile_b, K0) in matmul dtype

    h1 = jnp.dot(x, w1_ref[...], preferred_element_type=jnp.float32) + b1_ref[...]
    h1 = jnp.maximum(h1, 0.0)                               # f32 ReLU (VPU)

    h2 = jnp.dot(h1.astype(w2_ref.dtype), w2_ref[...],
                 preferred_element_type=jnp.float32) + b2_ref[...]
    h2 = jnp.maximum(h2, 0.0)

    z = jnp.dot(h2.astype(w3_ref.dtype), w3_ref[...],
                preferred_element_type=jnp.float32) + b3_ref[...]
    o_ref[...] = jax.nn.sigmoid(z).astype(o_ref.dtype)      # sigmoid -> EUP, lane-dense store


def mlp_forward(x, params, *, tile_b=256, matmul_dtype=jnp.bfloat16):
    """Fused MLP forward. x: (B, in_dim) f32. params: (w1,b1,w2,b2,w3,b3), w as (in, out)."""
    w1, b1, w2, b2, w3, b3 = params
    B, in_dim = x.shape
    out_dim = w3.shape[1]

    # --- pad feature dims to lane width (128) so matmuls and stores are lane-dense ---
    K0 = _round_up(in_dim, LANE)
    H1 = _round_up(w1.shape[1], LANE)
    H2 = _round_up(w2.shape[1], LANE)
    N = _round_up(out_dim, LANE)

    # --- batch tiling: large M for the MXU, sublane-aligned, pad batch to a tile multiple ---
    tile_b = max(SUBLANE_ALIGN, min(tile_b, _round_up(B, SUBLANE_ALIGN)))
    tile_b = _round_up(tile_b, SUBLANE_ALIGN)
    B_pad = _round_up(B, tile_b)
    grid = (B_pad // tile_b,)

    # --- pad + cast operands (x/weights in matmul dtype, biases stay f32) ---
    xp = _pad_to(x, (B_pad, K0)).astype(matmul_dtype)
    w1p = _pad_to(w1, (K0, H1)).astype(matmul_dtype)
    w2p = _pad_to(w2, (H1, H2)).astype(matmul_dtype)
    w3p = _pad_to(w3, (H2, N)).astype(matmul_dtype)
    b1p = _pad_to(b1, (1, H1)).astype(jnp.float32)
    b2p = _pad_to(b2, (1, H2)).astype(jnp.float32)
    b3p = _pad_to(b3, (1, N)).astype(jnp.float32)

    # --- advisory cost estimate for XLA's scheduler ---
    flops = 2 * B_pad * (K0 * H1 + H1 * H2 + H2 * N)
    bytes_accessed = sum(int(a.size) * a.dtype.itemsize
                         for a in (xp, w1p, b1p, w2p, b2p, w3p, b3p))
    bytes_accessed += B_pad * N * 4  # f32 output
    cost = pl.CostEstimate(flops=flops,
                           transcendentals=B_pad * N,          # sigmoid
                           bytes_accessed=bytes_accessed)

    out = pl.pallas_call(
        mlp_kernel,
        out_shape=jax.ShapeDtypeStruct((B_pad, N), jnp.float32),
        grid=grid,
        in_specs=[
            pl.BlockSpec((tile_b, K0), lambda i: (i, 0)),   # x: pipelined over batch tiles
            pl.BlockSpec((K0, H1), lambda i: (0, 0)),       # weights/biases: constant block
            pl.BlockSpec((1, H1), lambda i: (0, 0)),        #   index -> VMEM-resident, not
            pl.BlockSpec((H1, H2), lambda i: (0, 0)),       #   re-DMA'd across grid steps
            pl.BlockSpec((1, H2), lambda i: (0, 0)),
            pl.BlockSpec((H2, N), lambda i: (0, 0)),
            pl.BlockSpec((1, N), lambda i: (0, 0)),
        ],
        out_specs=pl.BlockSpec((tile_b, N), lambda i: (i, 0)),
        compiler_params=pltpu.CompilerParams(
            dimension_semantics=("parallel",),               # batch axis -> megacore
            vmem_limit_bytes=32 * 1024 * 1024,               # well under v7x's 64 MiB
        ),
        cost_estimate=cost,
    )(xp, w1p, b1p, w2p, b2p, w3p, b3p)

    # Drop batch/feature padding (padded fc3 columns hold sigmoid(0), discarded here).
    return out[:B, :out_dim].astype(x.dtype)


def init_mlp_params(key, input_size, output_size, dtype=jnp.float32):
    """PyTorch nn.Linear-equivalent init; weights stored pre-transposed as (in, out)."""
    hidden = [2 * input_size, input_size]
    dims = [(input_size, hidden[0]), (hidden[0], hidden[1]), (hidden[1], output_size)]
    params = []
    for fan_in, fan_out in dims:
        key, kw, kb = jax.random.split(key, 3)
        bound = 1.0 / (fan_in ** 0.5)
        w = jax.random.uniform(kw, (fan_in, fan_out), dtype, -bound, bound)
        b = jax.random.uniform(kb, (1, fan_out), dtype, -bound, bound)
        params.extend([w, b])
    return tuple(params)


def mlp_reference(x, params, matmul_dtype=None):
    """Pure-JAX reference; optionally mimics the kernel's bf16 matmul inputs."""
    w1, b1, w2, b2, w3, b3 = params
    cast = (lambda a: a.astype(matmul_dtype)) if matmul_dtype is not None else (lambda a: a)
    h1 = jnp.maximum(jnp.dot(cast(x), cast(w1), preferred_element_type=jnp.float32) + b1, 0.0)
    h2 = jnp.maximum(jnp.dot(cast(h1), cast(w2), preferred_element_type=jnp.float32) + b2, 0.0)
    return jax.nn.sigmoid(jnp.dot(cast(h2), cast(w3), preferred_element_type=jnp.float32) + b3)


if __name__ == "__main__":
    key = jax.random.PRNGKey(0)
    batch, input_size, output_size = 128, 32, 16   # hidden = [64, 32] per the module spec

    k_x, k_p = jax.random.split(key)
    x = jax.random.normal(k_x, (batch, input_size), jnp.float32)
    params = init_mlp_params(k_p, input_size, output_size)

    out = mlp_forward(x, params)                   # bf16 MXU inputs, f32 accumulate/epilogue
    out = jax.block_until_ready(out)
    assert out.shape == (batch, output_size)
    assert bool(jnp.all(jnp.isfinite(out)))

    ref_bf16 = mlp_reference(x, params, matmul_dtype=jnp.bfloat16)  # same-precision reference
    ref_f32 = mlp_reference(x, params)                              # full-precision reference
    assert jnp.allclose(out, ref_bf16, atol=5e-3, rtol=5e-3)
    assert jnp.allclose(out, ref_f32, atol=2.5e-2, rtol=2.5e-2)

    print("KERNEL_OK")
</pallas_src>

<mosaic_0001>
module attributes {stable_mosaic.version = 11 : i64} {
  func.func @mlp_kernel(%arg0: i32, %arg1: memref<128x128xbf16, #tpu.memory_space<vmem>>, %arg2: memref<128x128xbf16, #tpu.memory_space<vmem>>, %arg3: memref<1x128xf32, #tpu.memory_space<vmem>>, %arg4: memref<128x128xbf16, #tpu.memory_space<vmem>>, %arg5: memref<1x128xf32, #tpu.memory_space<vmem>>, %arg6: memref<128x128xbf16, #tpu.memory_space<vmem>>, %arg7: memref<1x128xf32, #tpu.memory_space<vmem>>, %arg8: memref<128x128xf32, #tpu.memory_space<vmem>>) attributes {dimension_semantics = [#tpu.dimension_semantics<parallel>], iteration_bounds = array<i64: 1>, scalar_prefetch = 0 : i64, scratch_operands = 0 : i64, tpu.core_type = #tpu.core_type<tc>, window_params = [{transform_indices = @transform_0, window_bounds = array<i64: 128, 128>}, {pipeline_mode = #tpu.pipeline_mode<synchronous>, transform_indices = @transform_1, window_bounds = array<i64: 128, 128>}, {pipeline_mode = #tpu.pipeline_mode<synchronous>, transform_indices = @transform_2, window_bounds = array<i64: 1, 128>}, {pipeline_mode = #tpu.pipeline_mode<synchronous>, transform_indices = @transform_3, window_bounds = array<i64: 128, 128>}, {pipeline_mode = #tpu.pipeline_mode<synchronous>, transform_indices = @transform_4, window_bounds = array<i64: 1, 128>}, {pipeline_mode = #tpu.pipeline_mode<synchronous>, transform_indices = @transform_5, window_bounds = array<i64: 128, 128>}, {pipeline_mode = #tpu.pipeline_mode<synchronous>, transform_indices = @transform_6, window_bounds = array<i64: 1, 128>}, {transform_indices = @transform_7, window_bounds = array<i64: 128, 128>}]} {
    %c0 = arith.constant 0 : index
    %c0_0 = arith.constant 0 : index
    %0 = vector.load %arg1[%c0, %c0_0] : memref<128x128xbf16, #tpu.memory_space<vmem>>, vector<128x128xbf16>
    %c0_1 = arith.constant 0 : index
    %c0_2 = arith.constant 0 : index
    %1 = vector.load %arg2[%c0_1, %c0_2] : memref<128x128xbf16, #tpu.memory_space<vmem>>, vector<128x128xbf16>
    %cst = arith.constant dense<0.000000e+00> : vector<128x128xf32>
    %2 = tpu.matmul %0, %1, %cst {dimension_numbers = #tpu.dot_dimension_numbers<[1], [0], [0], [1], [0, 0, 1, 1], [], []>} : vector<128x128xbf16>, vector<128x128xbf16>, vector<128x128xf32> -> vector<128x128xf32>
    %c0_3 = arith.constant 0 : index
    %c0_4 = arith.constant 0 : index
    %3 = vector.load %arg3[%c0_3, %c0_4] : memref<1x128xf32, #tpu.memory_space<vmem>>, vector<1x128xf32>
    %4 = vector.broadcast %3 : vector<1x128xf32> to vector<128x128xf32>
    %5 = arith.addf %2, %4 : vector<128x128xf32>
    %cst_5 = arith.constant 0.000000e+00 : f32
    %6 = vector.broadcast %cst_5 : f32 to vector<128x128xf32>
    %7 = arith.maximumf %5, %6 : vector<128x128xf32>
    %8 = arith.truncf %7 : vector<128x128xf32> to vector<128x128xbf16>
    %c0_6 = arith.constant 0 : index
    %c0_7 = arith.constant 0 : index
    %9 = vector.load %arg4[%c0_6, %c0_7] : memref<128x128xbf16, #tpu.memory_space<vmem>>, vector<128x128xbf16>
    %cst_8 = arith.constant dense<0.000000e+00> : vector<128x128xf32>
    %10 = tpu.matmul %8, %9, %cst_8 {dimension_numbers = #tpu.dot_dimension_numbers<[1], [0], [0], [1], [0, 0, 1, 1], [], []>} : vector<128x128xbf16>, vector<128x128xbf16>, vector<128x128xf32> -> vector<128x128xf32>
    %c0_9 = arith.constant 0 : index
    %c0_10 = arith.constant 0 : index
    %11 = vector.load %arg5[%c0_9, %c0_10] : memref<1x128xf32, #tpu.memory_space<vmem>>, vector<1x128xf32>
    %12 = vector.broadcast %11 : vector<1x128xf32> to vector<128x128xf32>
    %13 = arith.addf %10, %12 : vector<128x128xf32>
    %cst_11 = arith.constant 0.000000e+00 : f32
    %14 = vector.broadcast %cst_11 : f32 to vector<128x128xf32>
    %15 = arith.maximumf %13, %14 : vector<128x128xf32>
    %16 = arith.truncf %15 : vector<128x128xf32> to vector<128x128xbf16>
    %c0_12 = arith.constant 0 : index
    %c0_13 = arith.constant 0 : index
    %17 = vector.load %arg6[%c0_12, %c0_13] : memref<128x128xbf16, #tpu.memory_space<vmem>>, vector<128x128xbf16>
    %cst_14 = arith.constant dense<0.000000e+00> : vector<128x128xf32>
    %18 = tpu.matmul %16, %17, %cst_14 {dimension_numbers = #tpu.dot_dimension_numbers<[1], [0], [0], [1], [0, 0, 1, 1], [], []>} : vector<128x128xbf16>, vector<128x128xbf16>, vector<128x128xf32> -> vector<128x128xf32>
    %c0_15 = arith.constant 0 : index
    %c0_16 = arith.constant 0 : index
    %19 = vector.load %arg7[%c0_15, %c0_16] : memref<1x128xf32, #tpu.memory_space<vmem>>, vector<1x128xf32>
    %20 = vector.broadcast %19 : vector<1x128xf32> to vector<128x128xf32>
    %21 = arith.addf %18, %20 : vector<128x128xf32>
    %22 = arith.negf %21 : vector<128x128xf32>
    %23 = math.exp %22 : vector<128x128xf32>
    %cst_17 = arith.constant 1.000000e+00 : f32
    %24 = vector.broadcast %cst_17 : f32 to vector<128x128xf32>
    %25 = arith.addf %24, %23 : vector<128x128xf32>
    %26 = arith.divf %24, %25 : vector<128x128xf32>
    %c0_18 = arith.constant 0 : index
    %c0_19 = arith.constant 0 : index
    %27 = vector.load %arg8[%c0_18, %c0_19] : memref<128x128xf32, #tpu.memory_space<vmem>>, vector<128x128xf32>
    tpu.vector_store %arg8[%c0_18, %c0_19], %26 {strides = array<i32>} : memref<128x128xf32, #tpu.memory_space<vmem>>, vector<128x128xf32>,
    return
  }
  func.func @transform_0(%arg0: i32) -> (i32, i32) {
    %c0_i32 = arith.constant 0 : i32
    %c0_i32_0 = arith.constant 0 : i32
    return %arg0, %c0_i32 : i32, i32
  }
  func.func @transform_1(%arg0: i32) -> (i32, i32) {
    %c0_i32 = arith.constant 0 : i32
    %c0_i32_0 = arith.constant 0 : i32
    %c0_i32_1 = arith.constant 0 : i32
    return %c0_i32, %c0_i32_0 : i32, i32
  }
  func.func @transform_2(%arg0: i32) -> (i32, i32) {
    %c0_i32 = arith.constant 0 : i32
    %c0_i32_0 = arith.constant 0 : i32
    %c0_i32_1 = arith.constant 0 : i32
    return %c0_i32, %c0_i32_0 : i32, i32
  }
  func.func @transform_3(%arg0: i32) -> (i32, i32) {
    %c0_i32 = arith.constant 0 : i32
    %c0_i32_0 = arith.constant 0 : i32
    %c0_i32_1 = arith.constant 0 : i32
    return %c0_i32, %c0_i32_0 : i32, i32
  }
  func.func @transform_4(%arg0: i32) -> (i32, i32) {
    %c0_i32 = arith.constant 0 : i32
    %c0_i32_0 = arith.constant 0 : i32
    %c0_i32_1 = arith.constant 0 : i32
    return %c0_i32, %c0_i32_0 : i32, i32
  }
  func.func @transform_5(%arg0: i32) -> (i32, i32) {
    %c0_i32 = arith.constant 0 : i32
    %c0_i32_0 = arith.constant 0 : i32
    %c0_i32_1 = arith.constant 0 : i32
    return %c0_i32, %c0_i32_0 : i32, i32
  }
  func.func @transform_6(%arg0: i32) -> (i32, i32) {
    %c0_i32 = arith.constant 0 : i32
    %c0_i32_0 = arith.constant 0 : i32
    %c0_i32_1 = arith.constant 0 : i32
    return %c0_i32, %c0_i32_0 : i32, i32
  }
  func.func @transform_7(%arg0: i32) -> (i32, i32) {
    %c0_i32 = arith.constant 0 : i32
    %c0_i32_0 = arith.constant 0 : i32
    return %arg0, %c0_i32 : i32, i32
  }
}

</mosaic_0001>

<bundles_post_ra>
// kernel: tpu_custom_call.1
= control target key start
LH: loop header
LB: loop body
LE: loop exit
PB: predicated region body
PF: predicated region fallthrough
CT: control target
= control target key end

     0   :  { %12 = vsyncpa [#allocation3], 0  ;;  %s1363_s0 = inlined_call_operand.hbm [shape: bf16[128,128], index: 0, kind: input, shape index: {}]   ;;  %s1364_s1 = inlined_call_operand.hbm [shape: bf16[128,128], index: 1, kind: input, shape index: {}]   ;;  %s1365_s2 = inlined_call_operand.vmem [shape: f32[1,128], index: 2, kind: input, shape index: {}]   ;;  %s1366_s3 = inlined_call_operand.hbm [shape: bf16[128,128], index: 3, kind: input, shape index: {}]   ;;  %s1367_s4 = inlined_call_operand.vmem [shape: f32[1,128], index: 4, kind: input, shape index: {}]   ;;  %s1368_s5 = inlined_call_operand.hbm [shape: bf16[128,128], index: 5, kind: input, shape index: {}]   ;;  %s1369_s6 = inlined_call_operand.vmem [shape: f32[1,128], index: 6, kind: input, shape index: {}]   ;;  %s1370_s7 = inlined_call_operand.hbm [shape: f32[128,128], index: 7, kind: output, shape index: {}]  }
   0x1   :  { %13 = vsyncpa [#allocation6], 0 }
   0x2   :  { %14 = vsyncpa [#allocation9], 0 }
   0x3   :  { %15 = vsyncpa [#allocation4], 0  ;;  %s1254_s24 = smov [#allocation5]   ;;  %s1255_s26 = smov [#allocation2]  }
   0x4   :  { %s33_s25 = sshll.u32 %s1254_s24, 4  ;;  %s21_s27 = sshll.u32 %s1255_s26, 4  ;;  %s34_s25 = int_to_ptr.vmem [resolvable:$true] %s33_s25  ;;  %s22_s27 = int_to_ptr.vmem [resolvable:$true] %s21_s27 }
   0x5   :  { %s1154_s28 = scalar_lea.vmem %s34_s25, 1024  ;;  %p1159_p1 = scmp.lt.s32.totalorder %s34_s25, %s34_s25 }
   0x6   :  { %p1155_p0 = scmp.ne.s32.totalorder %s34_s25, %s1154_s28  ;;  %p1160_p2 = scmp.lt.s32.totalorder %s1154_s28, %s1154_s28 }
   0x8   :  { %p1161_p3 = por %p1160_p2, %p1159_p1 }
   0xa   :  { %p1162_p4 = pnand %p1161_p3, %p1155_p0 }
   0xc   :  { %1165 = shalt.err (!%p1162_p4)
}
   0xd   :  { %s1256_s29 = smov 64   ;;  %s1257_s30 = smov 4  }
   0xe   :  { %39 = dma.hbm_to_vmem [thread:$0]  %s1364_s1, 1024, %s34_s25, [#allocation6], %s1256_s29, %s1256_s29, %s1257_s30  }
   0xf   :  { %s1174_s10 = scalar_lea.vmem %s22_s27, 1024  ;;  %p1179_p6 = scmp.lt.s32.totalorder %s22_s27, %s22_s27 }
  0x10   :  { %p1175_p5 = scmp.ne.s32.totalorder %s22_s27, %s1174_s10  ;;  %p1180_p7 = scmp.lt.s32.totalorder %s1174_s10, %s1174_s10 }
  0x12   :  { %p1181_p8 = por %p1180_p7, %p1179_p6 }
  0x14   :  { %p1182_p9 = pnand %p1181_p8, %p1175_p5 }
  0x16   :  { %1185 = shalt.err (!%p1182_p9)
}
  0x17   :  { %27 = dma.hbm_to_vmem [thread:$0]  %s1363_s0, 1024, %s22_s27, [#allocation3], %s1256_s29, %s1256_s29, %s1257_s30  }
  0x18   :  { %s1258_s13 = smov [#allocation7]   ;;  %s1259_s15 = smov [#allocation8]  }
  0x19   :  { %s47_s14 = sshll.u32 %s1258_s13, 4  ;;  %s61_s16 = sshll.u32 %s1259_s15, 4  ;;  %s48_s14 = int_to_ptr.vmem [resolvable:$true] %s47_s14  ;;  %s62_s16 = int_to_ptr.vmem [resolvable:$true] %s61_s16 }
  0x1a   :  { %s1194_s1 = scalar_lea.vmem %s48_s14, 1024  ;;  %p1199_p11 = scmp.lt.s32.totalorder %s48_s14, %s48_s14 }
  0x1b   :  { %p1195_p10 = scmp.ne.s32.totalorder %s48_s14, %s1194_s1  ;;  %p1200_p12 = scmp.lt.s32.totalorder %s1194_s1, %s1194_s1 }
  0x1d   :  { %p1201_p13 = por %p1200_p12, %p1199_p11 }
  0x1f   :  { %p1202_p0 = pnand %p1201_p13, %p1195_p10 }
  0x21   :  { %1205 = shalt.err (!%p1202_p0)
}
  0x22   :  { %53 = dma.hbm_to_vmem [thread:$0]  %s1366_s3, 1024, %s48_s14, [#allocation6], %s1256_s29, %s1256_s29, %s1257_s30  }
  0x23   :  { %s1214_s0 = scalar_lea.vmem %s62_s16, 1024  ;;  %p1219_p2 = scmp.lt.s32.totalorder %s62_s16, %s62_s16 }
  0x24   :  { %p1215_p1 = scmp.ne.s32.totalorder %s62_s16, %s1214_s0  ;;  %p1220_p3 = scmp.lt.s32.totalorder %s1214_s0, %s1214_s0 }
  0x26   :  { %p1221_p4 = por %p1220_p3, %p1219_p2 }
  0x28   :  { %p1222_p5 = pnand %p1221_p4, %p1215_p1 }
  0x2a   :  { %1225 = shalt.err (!%p1222_p5)
}
  0x2b   :  { %67 = dma.hbm_to_vmem [thread:$0]  %s1368_s5, 1024, %s62_s16, [#allocation9], %s1256_s29, %s1256_s29, %s1257_s30  }
  0x2c   :  { %1246 = dma.done.wait [#allocation3], 1024  }
  0x2d   :  { %1247 = vsyncadd [#allocation3], 4294966272 }
  0x2e   :  { %1248 = dma.done.wait [#allocation6], 2048  }
  0x2f   :  { %1249 = vsyncadd [#allocation6], 4294965248 }
  0x30   :  { %1250 = dma.done.wait [#allocation9], 1024  }
  0x31   :  { %1251 = vsyncadd [#allocation9], 4294966272  ;;  %v1050_v0 = vld [vmem:[#allocation5 + $0x38] sm:$0xff]   ;;  %v1051_v1 = vld [vmem:[#allocation5 + $0x30] sm:$0xff]  }
  0x32   :  { %929 = vmatprep.subr.bf16.mxu0 %v1050_v0  ;;  %v1052_v2 = vld [vmem:[#allocation5 + $0x28] sm:$0xff]   ;;  %v1053_v3 = vld [vmem:[#allocation5 + $0x20] sm:$0xff]   ;;  %v1054_v5 = vld [vmem:[#allocation5 + $0x18] sm:$0xff]  }
  0x33   :  { %930 = vmatpush3.bf16.msra.mxu0 %v1050_v0  ;;  %v1058_v4 = vld [vmem:[#allocation2] sm:$0xff]   ;;  %v1055_v6 = vld [vmem:[#allocation5 + $0x10] sm:$0xff]   ;;  %v1066_v7 = vld [vmem:[#allocation7 + $0x38] sm:$0xff]  }
  0x34   :  { %931 = vmatprep.subr.bf16.mxu0 %v1051_v1  ;;  %945 = vmatprep.mubr.bf16.mxu0 %v1058_v4  ;;  %v1067_v8 = vld [vmem:[#allocation7 + $0x30] sm:$0xff]   ;;  %v1056_v9 = vld [vmem:[#allocation5 + $0x8] sm:$0xff]   ;;  %v1057_v11 = vld [vmem:[#allocation5] sm:$0xff]  }
  0x35   :  { %961 = vmatprep.subr.bf16.mxu1 %v1066_v7  ;;  %v1068_v10 = vld [vmem:[#allocation7 + $0x28] sm:$0xff]   ;;  %v1069_v12 = vld [vmem:[#allocation7 + $0x20] sm:$0xff]   ;;  %v1070_v13 = vld [vmem:[#allocation7 + $0x18] sm:$0xff]  }
  0x36   :  { %962 = vmatpush3.bf16.msra.mxu1 %v1066_v7  ;;  %v1059_v14 = vld [vmem:[#allocation2 + $0x8] sm:$0xff]   ;;  %v1060_v15 = vld [vmem:[#allocation2 + $0x10] sm:$0xff]   ;;  %v1061_v16 = vld [vmem:[#allocation2 + $0x18] sm:$0xff]  }
  0x37   :  { %932 = vmatpush3.bf16.msra.mxu0 %v1051_v1  ;;  %963 = vmatprep.subr.bf16.mxu1 %v1067_v8  ;;  %v1062_v17 = vld [vmem:[#allocation2 + $0x20] sm:$0xff]   ;;  %v1063_v18 = vld [vmem:[#allocation2 + $0x28] sm:$0xff]   ;;  %v1064_v19 = vld [vmem:[#allocation2 + $0x30] sm:$0xff]  }
  0x38   :  { %933 = vmatprep.subr.bf16.mxu0 %v1052_v2  ;;  %v1065_v20 = vld [vmem:[#allocation2 + $0x38] sm:$0xff]   ;;  %v1071_v21 = vld [vmem:[#allocation7 + $0x10] sm:$0xff]   ;;  %v1072_v22 = vld [vmem:[#allocation7 + $0x8] sm:$0xff]  }
  0x39   :  { %v1073_v23 = vld [vmem:[#allocation7] sm:$0xff]   ;;  %v1074_v24 = vld [vmem:[#allocation8 + $0x38] sm:$0xff]   ;;  %v1075_v25 = vld [vmem:[#allocation8 + $0x30] sm:$0xff]  }
  0x3a   :  { %964 = vmatpush3.bf16.msra.mxu1 %v1067_v8  ;;  %v1076_v26 = vld [vmem:[#allocation8 + $0x28] sm:$0xff]   ;;  %v1077_v27 = vld [vmem:[#allocation8 + $0x20] sm:$0xff]   ;;  %v1327_v28 = vld [vmem:[#allocation8 + $0x18] sm:$0xff]  }
  0x3b   :  { %934 = vmatpush3.bf16.msra.mxu0 %v1052_v2  ;;  %965 = vmatprep.subr.bf16.mxu1 %v1068_v10  ;;  %v830_v31 = vld [vmem:[%s1365_s2] ss:$0 sm:$0xff] }
  0x3c   :  { %935 = vmatprep.subr.bf16.mxu0 %v1053_v3 }
  0x3e   :  { %966 = vmatpush3.bf16.msra.mxu1 %v1068_v10 }
  0x3f   :  { %936 = vmatpush3.bf16.msra.mxu0 %v1053_v3  ;;  %967 = vmatprep.subr.bf16.mxu1 %v1069_v12 }
  0x40   :  { %937 = vmatprep.subr.bf16.mxu0 %v1054_v5 }
  0x42   :  { %968 = vmatpush3.bf16.msra.mxu1 %v1069_v12 }
  0x43   :  { %938 = vmatpush3.bf16.msra.mxu0 %v1054_v5  ;;  %969 = vmatprep.subr.bf16.mxu1 %v1070_v13 }
  0x44   :  { %939 = vmatprep.subr.bf16.mxu0 %v1055_v6 }
  0x46   :  { %970 = vmatpush3.bf16.msra.mxu1 %v1070_v13 }
  0x47   :  { %940 = vmatpush3.bf16.msra.mxu0 %v1055_v6  ;;  %971 = vmatprep.subr.bf16.mxu1 %v1071_v21 }
  0x48   :  { %941 = vmatprep.subr.bf16.mxu0 %v1056_v9 }
  0x4a   :  { %972 = vmatpush3.bf16.msra.mxu1 %v1071_v21 }
  0x4b   :  { %942 = vmatpush3.bf16.msra.mxu0 %v1056_v9  ;;  %973 = vmatprep.subr.bf16.mxu1 %v1072_v22 }
  0x4c   :  { %943 = vmatprep.subr.bf16.mxu0 %v1057_v11 }
  0x4e   :  { %974 = vmatpush3.bf16.msra.mxu1 %v1072_v22  ;;  %v1079_v22 = vld [vmem:[#allocation8 + $0x10] sm:$0xff]  }
  0x4f   :  { %944 = vmatpush3.bf16.msra.mxu0 %v1057_v11  ;;  %975 = vmatprep.subr.bf16.mxu1 %v1073_v23 }
  0x50   :  { %993 = vmatprep.subr.bf16.mxu0 %v1074_v24 }
  0x52   :  { %946 = vmatmul.mubr.bf16.vlgmr.msra.gmra.mxu0 %v1059_v14  ;;  %976 = vmatpush3.bf16.msra.mxu1 %v1073_v23  ;;  %v1080_v23 = vld [vmem:[#allocation8 + $0x8] sm:$0xff]  }
  0x53   :  { %949 = vmatprep.mubr.bf16.mxu0 %v1060_v15  ;;  %1025 = vmatprep.subr.bf16.mxu1 %v1074_v24 }
  0x54   :  { %994 = vmatpush3.bf16.msra.mxu0 %v1074_v24 }
  0x55   :  { %995 = vmatprep.subr.bf16.mxu0 %v1075_v25 }
  0x58   :  { %996 = vmatpush3.bf16.msra.mxu0 %v1075_v25 }
  0x59   :  { %997 = vmatprep.subr.bf16.mxu0 %v1076_v26 }
  0x5a   :  { %950 = vmatmul.mubr.bf16.gmra.mxu0 %v1061_v16 }
  0x5b   :  { %953 = vmatprep.mubr.bf16.mxu0 %v1062_v17 }
  0x5c   :  { %998 = vmatpush3.bf16.msra.mxu0 %v1076_v26 }
  0x5d   :  { %999 = vmatprep.subr.bf16.mxu0 %v1077_v27 }
  0x60   :  { %1000 = vmatpush3.bf16.msra.mxu0 %v1077_v27 }
  0x61   :  { %1001 = vmatprep.subr.bf16.mxu0 %v1327_v28 }
  0x62   :  { %954 = vmatmul.mubr.bf16.gmra.mxu0 %v1063_v18 }
  0x63   :  { %957 = vmatprep.mubr.bf16.mxu0 %v1064_v19 }
  0x64   :  { %1002 = vmatpush3.bf16.msra.mxu0 %v1327_v28 }
  0x65   :  { %1003 = vmatprep.subr.bf16.mxu0 %v1079_v22 }
  0x68   :  { %1004 = vmatpush3.bf16.msra.mxu0 %v1079_v22 }
  0x69   :  { %1005 = vmatprep.subr.bf16.mxu0 %v1080_v23 }
  0x6a   :  { %958 = vmatmul.mubr.bf16.gmra.mxu0 %v1065_v20 }
  0x6c   :  { %1006 = vmatpush3.bf16.msra.mxu0 %v1080_v23 }
 0x112   :  { %v947_v29 = vpop.f32.mrf.mxu0 }
 0x113   :  { %v261_v35 = vadd.f32 %v947_v29, %v830_v31 }
 0x114   :  { %v252_v30 = vpop.f32.mrf.mxu0 }
 0x115   :  { %v253_v33 = vadd.f32 %v830_v31, %v252_v30  ;;  %v317_v42 = vmax.f32 %v261_v35, 0.0 }
 0x116   :  { %v948_v32 = vpop.f32.mrf.mxu0 }
 0x117   :  { %v264_v34 = vadd.f32 %v948_v32, %v830_v31  ;;  %v315_v40 = vmax.f32 %v253_v33, 0.0 }
 0x118   :  { %v255_v36 = vpop.f32.mrf.mxu0 }
 0x119   :  { %v256_v37 = vadd.f32 %v830_v31, %v255_v36  ;;  %v318_v38 = vmax.f32 %v264_v34, 0.0 }
 0x11a   :  { %v951_v39 = vpop.f32.mrf.mxu0 }
 0x11b   :  { %v316_v41 = vmax.f32 %v256_v37, 0.0  ;;  %v332_v45 = vpack.c.bf16 %v318_v38, %v317_v42  ;;  %v277_v49 = vadd.f32 %v951_v39, %v830_v31 }
 0x11c   :  { %v268_v43 = vpop.f32.mrf.mxu0 }
 0x11d   :  { %v331_v44 = vpack.c.bf16 %v316_v41, %v315_v40  ;;  %v269_v47 = vadd.f32 %v830_v31, %v268_v43  ;;  %v321_v56 = vmax.f32 %v277_v49, 0.0 }
 0x11e   :  { %v952_v46 = vpop.f32.mrf.mxu0 }
 0x11f   :  { %v280_v48 = vadd.f32 %v952_v46, %v830_v31  ;;  %977 = vmatprep.mubr.bf16.mxu1 %v331_v44  ;;  %v319_v54 = vmax.f32 %v269_v47, 0.0 }
 0x120   :  { %v271_v50 = vpop.f32.mrf.mxu0  ;;  %978 = vmatmul.mubr.bf16.vlgmr.msra.gmra.mxu1 %v332_v45 }
 0x121   :  { %v272_v51 = vadd.f32 %v830_v31, %v271_v50  ;;  %1033 = vmatpush3.bf16.msra.mxu1 %v1074_v24  ;;  %v322_v52 = vmax.f32 %v280_v48, 0.0  ;;  %v1081_v24 = vld [vmem:[#allocation8] sm:$0xff]  }
 0x122   :  { %v955_v53 = vpop.f32.mrf.mxu0  ;;  %1026 = vmatprep.subr.bf16.mxu1 %v1075_v25  ;;  %1007 = vmatprep.subr.bf16.mxu0 %v1081_v24 }
 0x123   :  { %v320_v55 = vmax.f32 %v272_v51, 0.0  ;;  %v334_v59 = vpack.c.bf16 %v322_v52, %v321_v56  ;;  %v293_v63 = vadd.f32 %v955_v53, %v830_v31  ;;  %1008 = vmatpush3.bf16.msra.mxu0 %v1081_v24 }
 0x124   :  { %v284_v57 = vpop.f32.mrf.mxu0 }
 0x125   :  { %v333_v58 = vpack.c.bf16 %v320_v55, %v319_v54  ;;  %1034 = vmatpush3.bf16.msra.mxu1 %v1075_v25  ;;  %v285_v61 = vadd.f32 %v830_v31, %v284_v57  ;;  %v325_v6 = vmax.f32 %v293_v63, 0.0 }
 0x126   :  { %v956_v60 = vpop.f32.mrf.mxu0  ;;  %1027 = vmatprep.subr.bf16.mxu1 %v1076_v26 }
 0x127   :  { %v296_v62 = vadd.f32 %v956_v60, %v830_v31  ;;  %981 = vmatprep.mubr.bf16.mxu1 %v333_v58  ;;  %v323_v4 = vmax.f32 %v285_v61, 0.0 }
 0x128   :  { %v287_v0 = vpop.f32.mrf.mxu0  ;;  %982 = vmatmul.mubr.bf16.gmra.mxu1 %v334_v59 }
 0x129   :  { %v288_v1 = vadd.f32 %v830_v31, %v287_v0  ;;  %1035 = vmatpush3.bf16.msra.mxu1 %v1076_v26  ;;  %v326_v2 = vmax.f32 %v296_v62, 0.0 }
 0x12a   :  { %v959_v3 = vpop.f32.mrf.mxu0  ;;  %1028 = vmatprep.subr.bf16.mxu1 %v1077_v27 }
 0x12b   :  { %v324_v5 = vmax.f32 %v288_v1, 0.0  ;;  %v336_v9 = vpack.c.bf16 %v326_v2, %v325_v6  ;;  %v309_v13 = vadd.f32 %v959_v3, %v830_v31 }
 0x12c   :  { %v300_v7 = vpop.f32.mrf.mxu0 }
 0x12d   :  { %v335_v8 = vpack.c.bf16 %v324_v5, %v323_v4  ;;  %1036 = vmatpush3.bf16.msra.mxu1 %v1077_v27  ;;  %v301_v11 = vadd.f32 %v830_v31, %v300_v7  ;;  %v329_v19 = vmax.f32 %v309_v13, 0.0  ;;  %v847_v27 = vld [vmem:[%s1367_s4] ss:$0 sm:$0xff] }
 0x12e   :  { %v960_v10 = vpop.f32.mrf.mxu0  ;;  %1029 = vmatprep.subr.bf16.mxu1 %v1327_v28 }
 0x12f   :  { %v312_v12 = vadd.f32 %v960_v10, %v830_v31  ;;  %985 = vmatprep.mubr.bf16.mxu1 %v335_v8  ;;  %v327_v17 = vmax.f32 %v301_v11, 0.0 }
 0x130   :  { %v303_v14 = vpop.f32.mrf.mxu0  ;;  %986 = vmatmul.mubr.bf16.gmra.mxu1 %v336_v9 }
 0x131   :  { %v304_v15 = vadd.f32 %v830_v31, %v303_v14  ;;  %1037 = vmatpush3.bf16.msra.mxu1 %v1327_v28  ;;  %v330_v16 = vmax.f32 %v312_v12, 0.0 }
 0x132   :  { %1030 = vmatprep.subr.bf16.mxu1 %v1079_v22 }
 0x133   :  { %v328_v18 = vmax.f32 %v304_v15, 0.0  ;;  %v338_v21 = vpack.c.bf16 %v330_v16, %v329_v19 }
 0x135   :  { %v337_v20 = vpack.c.bf16 %v328_v18, %v327_v17  ;;  %1038 = vmatpush3.bf16.msra.mxu1 %v1079_v22  ;;  %v1342_v18 = vld [vmem:[%s1369_s6] ss:$0 sm:$0xff]  ;;  %s1260_s6 = smov [#allocation10]  }
 0x136   :  { %1031 = vmatprep.subr.bf16.mxu1 %v1080_v23  ;;  %s816_s23 = sshll.u32 %s1260_s6, 4  ;;  %s817_s23 = int_to_ptr.vmem [resolvable:$true] %s816_s23 }
 0x137   :  { %989 = vmatprep.mubr.bf16.mxu1 %v337_v20  ;;  %s1226_s24 = scalar_lea.vmem %s817_s23, 2048  ;;  %p1231_p7 = scmp.lt.s32.totalorder %s817_s23, %s817_s23 }
 0x138   :  { %990 = vmatmul.mubr.bf16.gmra.mxu1 %v338_v21  ;;  %p1227_p6 = scmp.ne.s32.totalorder %s817_s23, %s1226_s24  ;;  %p1232_p8 = scmp.lt.s32.totalorder %s1226_s24, %s1226_s24 }
 0x139   :  { %1039 = vmatpush3.bf16.msra.mxu1 %v1080_v23 }
 0x13a   :  { %1032 = vmatprep.subr.bf16.mxu1 %v1081_v24  ;;  %p1233_p9 = por %p1232_p8, %p1231_p7 }
 0x13c   :  { %p1234_p10 = pnand %p1233_p9, %p1227_p6 }
 0x13d   :  { %1040 = vmatpush3.bf16.msra.mxu1 %v1081_v24 }
 0x1e0   :  { %v979_v25 = vpop.f32.mrf.mxu1 }
 0x1e1   :  { %v453_v31 = vadd.f32 %v979_v25, %v847_v27 }
 0x1e2   :  { %v444_v26 = vpop.f32.mrf.mxu1 }
 0x1e3   :  { %v445_v29 = vadd.f32 %v847_v27, %v444_v26  ;;  %v509_v38 = vmax.f32 %v453_v31, 0.0 }
 0x1e4   :  { %v980_v28 = vpop.f32.mrf.mxu1 }
 0x1e5   :  { %v456_v30 = vadd.f32 %v980_v28, %v847_v27  ;;  %v507_v36 = vmax.f32 %v445_v29, 0.0 }
 0x1e6   :  { %v447_v32 = vpop.f32.mrf.mxu1 }
 0x1e7   :  { %v448_v33 = vadd.f32 %v847_v27, %v447_v32  ;;  %v510_v34 = vmax.f32 %v456_v30, 0.0 }
 0x1e8   :  { %v983_v35 = vpop.f32.mrf.mxu1 }
 0x1e9   :  { %v508_v37 = vmax.f32 %v448_v33, 0.0  ;;  %v524_v41 = vpack.c.bf16 %v510_v34, %v509_v38  ;;  %v469_v45 = vadd.f32 %v983_v35, %v847_v27 }
 0x1ea   :  { %v460_v39 = vpop.f32.mrf.mxu1 }
 0x1eb   :  { %v523_v40 = vpack.c.bf16 %v508_v37, %v507_v36  ;;  %v461_v43 = vadd.f32 %v847_v27, %v460_v39  ;;  %v513_v52 = vmax.f32 %v469_v45, 0.0 }
 0x1ec   :  { %v984_v42 = vpop.f32.mrf.mxu1 }
 0x1ed   :  { %v472_v44 = vadd.f32 %v984_v42, %v847_v27  ;;  %1009 = vmatprep.mubr.bf16.mxu0 %v523_v40  ;;  %v511_v50 = vmax.f32 %v461_v43, 0.0 }
 0x1ee   :  { %v463_v46 = vpop.f32.mrf.mxu1  ;;  %1010 = vmatmul.mubr.bf16.vlgmr.msra.gmra.mxu0 %v524_v41 }
 0x1ef   :  { %v464_v47 = vadd.f32 %v847_v27, %v463_v46  ;;  %v514_v48 = vmax.f32 %v472_v44, 0.0 }
 0x1f0   :  { %v987_v49 = vpop.f32.mrf.mxu1 }
 0x1f1   :  { %v512_v51 = vmax.f32 %v464_v47, 0.0  ;;  %v526_v55 = vpack.c.bf16 %v514_v48, %v513_v52  ;;  %v485_v59 = vadd.f32 %v987_v49, %v847_v27 }
 0x1f2   :  { %v476_v53 = vpop.f32.mrf.mxu1 }
 0x1f3   :  { %v525_v54 = vpack.c.bf16 %v512_v51, %v511_v50  ;;  %v477_v57 = vadd.f32 %v847_v27, %v476_v53  ;;  %v517_v2 = vmax.f32 %v485_v59, 0.0 }
 0x1f4   :  { %v988_v56 = vpop.f32.mrf.mxu1 }
 0x1f5   :  { %v488_v58 = vadd.f32 %v988_v56, %v847_v27  ;;  %1013 = vmatprep.mubr.bf16.mxu0 %v525_v54  ;;  %v515_v0 = vmax.f32 %v477_v57, 0.0 }
 0x1f6   :  { %v479_v60 = vpop.f32.mrf.mxu1  ;;  %1014 = vmatmul.mubr.bf16.gmra.mxu0 %v526_v55 }
 0x1f7   :  { %v480_v61 = vadd.f32 %v847_v27, %v479_v60  ;;  %v518_v62 = vmax.f32 %v488_v58, 0.0 }
 0x1f8   :  { %v991_v63 = vpop.f32.mrf.mxu1 }
 0x1f9   :  { %v516_v1 = vmax.f32 %v480_v61, 0.0  ;;  %v528_v5 = vpack.c.bf16 %v518_v62, %v517_v2  ;;  %v501_v9 = vadd.f32 %v991_v63, %v847_v27 }
 0x1fa   :  { %v492_v3 = vpop.f32.mrf.mxu1 }
 0x1fb   :  { %v527_v4 = vpack.c.bf16 %v516_v1, %v515_v0  ;;  %v493_v7 = vadd.f32 %v847_v27, %v492_v3  ;;  %v521_v15 = vmax.f32 %v501_v9, 0.0 }
 0x1fc   :  { %v992_v6 = vpop.f32.mrf.mxu1 }
 0x1fd   :  { %v504_v8 = vadd.f32 %v992_v6, %v847_v27  ;;  %1017 = vmatprep.mubr.bf16.mxu1 %v527_v4  ;;  %v519_v13 = vmax.f32 %v493_v7, 0.0 }
 0x1fe   :  { %v495_v10 = vpop.f32.mrf.mxu1  ;;  %1018 = vmatmul.mubr.bf16.vlgmr.msra.gmra.mxu1 %v528_v5 }
 0x1ff   :  { %v496_v11 = vadd.f32 %v847_v27, %v495_v10  ;;  %v522_v12 = vmax.f32 %v504_v8, 0.0 }
 0x201   :  { %v520_v14 = vmax.f32 %v496_v11, 0.0  ;;  %v530_v17 = vpack.c.bf16 %v522_v12, %v521_v15 }
 0x203   :  { %v529_v16 = vpack.c.bf16 %v520_v14, %v519_v13 }
 0x205   :  { %1021 = vmatprep.mubr.bf16.mxu1 %v529_v16 }
 0x206   :  { %1022 = vmatmul.mubr.bf16.gmra.mxu1 %v530_v17 }
 0x2ae   :  { %v1011_v19 = vpop.f32.mrf.mxu0 }
 0x2af   :  { %v645_v20 = vadd.f32 %v1011_v19, %v1342_v18 }
 0x2b0   :  { %v636_v21 = vpop.f32.mrf.mxu0 }
 0x2b1   :  { %v867_v22 = vmul.f32 -1.442695, %v645_v20  ;;  %v637_v23 = vadd.f32 %v1342_v18, %v636_v21 }
 0x2b2   :  { %v1012_v24 = vpop.f32.mrf.mxu0 }
 0x2b3   :  { %1082 = vpow2.f32 %v867_v22  ;;  %v865_v25 = vmul.f32 -1.442695, %v637_v23  ;;  %v648_v26 = vadd.f32 %v1012_v24, %v1342_v18 }
 0x2b4   :  { %v639_v27 = vpop.f32.mrf.mxu0 }
 0x2b5   :  { %1084 = vpow2.f32 %v865_v25  ;;  %v868_v28 = vmul.f32 -1.442695, %v648_v26  ;;  %v640_v29 = vadd.f32 %v1342_v18, %v639_v27 }
 0x2b6   :  { %v1015_v30 = vpop.f32.mrf.mxu0 }
 0x2b7   :  { %1086 = vpow2.f32 %v868_v28  ;;  %v866_v31 = vmul.f32 -1.442695, %v640_v29  ;;  %v661_v32 = vadd.f32 %v1015_v30, %v1342_v18 }
 0x2b8   :  { %v652_v33 = vpop.f32.mrf.mxu0 }
 0x2b9   :  { %1088 = vpow2.f32 %v866_v31  ;;  %v871_v34 = vmul.f32 -1.442695, %v661_v32  ;;  %v653_v35 = vadd.f32 %v1342_v18, %v652_v33 }
 0x2ba   :  { %v1016_v36 = vpop.f32.mrf.mxu0 }
 0x2bb   :  { %1090 = vpow2.f32 %v871_v34  ;;  %v869_v37 = vmul.f32 -1.442695, %v653_v35  ;;  %v664_v38 = vadd.f32 %v1016_v36, %v1342_v18 }
 0x2bc   :  { %v655_v39 = vpop.f32.mrf.mxu0 }
 0x2bd   :  { %1092 = vpow2.f32 %v869_v37  ;;  %v872_v40 = vmul.f32 -1.442695, %v664_v38  ;;  %v656_v41 = vadd.f32 %v1342_v18, %v655_v39 }
 0x2be   :  { %v1019_v42 = vpop.f32.mrf.mxu1 }
 0x2bf   :  { %1094 = vpow2.f32 %v872_v40  ;;  %v870_v43 = vmul.f32 -1.442695, %v656_v41  ;;  %v677_v44 = vadd.f32 %v1019_v42, %v1342_v18 }
 0x2c0   :  { %v1083_v45 = vpop.eup %1082  ;;  %v668_v46 = vpop.f32.mrf.mxu1 }
 0x2c1   :  { %v749_v47 = vadd.f32 1.0, %v1083_v45  ;;  %1096 = vpow2.f32 %v870_v43  ;;  %v875_v48 = vmul.f32 -1.442695, %v677_v44  ;;  %v669_v49 = vadd.f32 %v1342_v18, %v668_v46 }
 0x2c2   :  { %v1085_v50 = vpop.eup %1084  ;;  %v1020_v51 = vpop.f32.mrf.mxu1 }
 0x2c3   :  { %1098 = vrcp.f32 %v749_v47  ;;  %v747_v52 = vadd.f32 1.0, %v1085_v50  ;;  %v873_v53 = vmul.f32 -1.442695, %v669_v49  ;;  %v680_v54 = vadd.f32 %v1020_v51, %v1342_v18 }
 0x2c4   :  { %v1087_v55 = vpop.eup %1086  ;;  %1100 = vpow2.f32 %v875_v48  ;;  %v671_v56 = vpop.f32.mrf.mxu1 }
 0x2c5   :  { %1102 = vrcp.f32 %v747_v52  ;;  %v750_v57 = vadd.f32 1.0, %v1087_v55  ;;  %v876_v58 = vmul.f32 -1.442695, %v680_v54  ;;  %v672_v59 = vadd.f32 %v1342_v18, %v671_v56 }
 0x2c6   :  { %v1089_v60 = vpop.eup %1088  ;;  %1104 = vpow2.f32 %v873_v53  ;;  %v1023_v61 = vpop.f32.mrf.mxu1 }
 0x2c7   :  { %1106 = vrcp.f32 %v750_v57  ;;  %v748_v62 = vadd.f32 1.0, %v1089_v60  ;;  %v874_v63 = vmul.f32 -1.442695, %v672_v59  ;;  %v693_v0 = vadd.f32 %v1023_v61, %v1342_v18 }
 0x2c8   :  { %v1091_v1 = vpop.eup %1090  ;;  %1108 = vpow2.f32 %v876_v58  ;;  %v684_v2 = vpop.f32.mrf.mxu1 }
 0x2c9   :  { %1110 = vrcp.f32 %v748_v62  ;;  %v753_v3 = vadd.f32 1.0, %v1091_v1  ;;  %v879_v4 = vmul.f32 -1.442695, %v693_v0  ;;  %v685_v5 = vadd.f32 %v1342_v18, %v684_v2 }
 0x2ca   :  { %v1093_v6 = vpop.eup %1092  ;;  %1112 = vpow2.f32 %v874_v63  ;;  %v1024_v7 = vpop.f32.mrf.mxu1 }
 0x2cb   :  { %1114 = vrcp.f32 %v753_v3  ;;  %v751_v8 = vadd.f32 1.0, %v1093_v6  ;;  %v877_v9 = vmul.f32 -1.442695, %v685_v5  ;;  %v696_v10 = vadd.f32 %v1024_v7, %v1342_v18 }
 0x2cc   :  { %v1095_v11 = vpop.eup %1094  ;;  %1116 = vpow2.f32 %v879_v4  ;;  %v687_v12 = vpop.f32.mrf.mxu1 }
 0x2cd   :  { %1118 = vrcp.f32 %v751_v8  ;;  %v754_v13 = vadd.f32 1.0, %v1095_v11  ;;  %v880_v14 = vmul.f32 -1.442695, %v696_v10  ;;  %v688_v15 = vadd.f32 %v1342_v18, %v687_v12 }
 0x2ce   :  { %v1097_v16 = vpop.eup %1096  ;;  %1120 = vpow2.f32 %v877_v9 }
 0x2cf   :  { %1122 = vrcp.f32 %v754_v13  ;;  %v752_v17 = vadd.f32 1.0, %v1097_v16  ;;  %v878_v19 = vmul.f32 -1.442695, %v688_v15 }
 0x2d0   :  { %v1099_v20 = vpop.eup %1098  ;;  %1124 = vpow2.f32 %v880_v14 }
 0x2d1   :  { %v1101_v21 = vpop.eup %1100  ;;  %797 = vst [vmem:[#allocation10 + $0x10] sm:$0xff] %v1099_v20  ;;  %1126 = vrcp.f32 %v752_v17 }
 0x2d2   :  { %v1103_v22 = vpop.eup %1102  ;;  %v757_v23 = vadd.f32 1.0, %v1101_v21  ;;  %1128 = vpow2.f32 %v878_v19 }
 0x2d3   :  { %v1105_v24 = vpop.eup %1104  ;;  %795 = vst [vmem:[#allocation10] sm:$0xff] %v1103_v22 }
 0x2d4   :  { %v1107_v25 = vpop.eup %1106  ;;  %1130 = vrcp.f32 %v757_v23  ;;  %v755_v26 = vadd.f32 1.0, %v1105_v24 }
 0x2d5   :  { %v1109_v27 = vpop.eup %1108  ;;  %798 = vst [vmem:[#allocation10 + $0x18] sm:$0xff] %v1107_v25 }
 0x2d6   :  { %v1111_v18 = vpop.eup %1110  ;;  %1132 = vrcp.f32 %v755_v26  ;;  %v758_v28 = vadd.f32 1.0, %v1109_v27 }
 0x2d7   :  { %v1113_v29 = vpop.eup %1112  ;;  %796 = vst [vmem:[#allocation10 + $0x8] sm:$0xff] %v1111_v18 }
 0x2d8   :  { %v1115_v30 = vpop.eup %1114  ;;  %1134 = vrcp.f32 %v758_v28  ;;  %v756_v31 = vadd.f32 1.0, %v1113_v29 }
 0x2d9   :  { %v1117_v32 = vpop.eup %1116  ;;  %801 = vst [vmem:[#allocation10 + $0x30] sm:$0xff] %v1115_v30 }
 0x2da   :  { %v1119_v33 = vpop.eup %1118  ;;  %1136 = vrcp.f32 %v756_v31  ;;  %v761_v34 = vadd.f32 1.0, %v1117_v32 }
 0x2db   :  { %v1121_v35 = vpop.eup %1120  ;;  %799 = vst [vmem:[#allocation10 + $0x20] sm:$0xff] %v1119_v33 }
 0x2dc   :  { %v1123_v36 = vpop.eup %1122  ;;  %1138 = vrcp.f32 %v761_v34  ;;  %v759_v37 = vadd.f32 1.0, %v1121_v35 }
 0x2dd   :  { %v1125_v38 = vpop.eup %1124  ;;  %802 = vst [vmem:[#allocation10 + $0x38] sm:$0xff] %v1123_v36 }
 0x2de   :  { %v1127_v39 = vpop.eup %1126  ;;  %1140 = vrcp.f32 %v759_v37  ;;  %v762_v40 = vadd.f32 1.0, %v1125_v38 }
 0x2df   :  { %v1129_v41 = vpop.eup %1128  ;;  %800 = vst [vmem:[#allocation10 + $0x28] sm:$0xff] %v1127_v39 }
 0x2e0   :  { %1142 = vrcp.f32 %v762_v40  ;;  %v760_v42 = vadd.f32 1.0, %v1129_v41 }
 0x2e1   :  { %v1131_v43 = vpop.eup %1130 }
 0x2e2   :  { %805 = vst [vmem:[#allocation10 + $0x50] sm:$0xff] %v1131_v43  ;;  %1144 = vrcp.f32 %v760_v42 }
 0x2e3   :  { %v1133_v44 = vpop.eup %1132 }
 0x2e4   :  { %803 = vst [vmem:[#allocation10 + $0x40] sm:$0xff] %v1133_v44 }
 0x2e5   :  { %v1135_v45 = vpop.eup %1134 }
 0x2e6   :  { %806 = vst [vmem:[#allocation10 + $0x58] sm:$0xff] %v1135_v45 }
 0x2e7   :  { %v1137_v46 = vpop.eup %1136 }
 0x2e8   :  { %804 = vst [vmem:[#allocation10 + $0x48] sm:$0xff] %v1137_v46 }
 0x2e9   :  { %v1139_v47 = vpop.eup %1138 }
 0x2ea   :  { %809 = vst [vmem:[#allocation10 + $0x70] sm:$0xff] %v1139_v47 }
 0x2eb   :  { %v1141_v48 = vpop.eup %1140 }
 0x2ec   :  { %807 = vst [vmem:[#allocation10 + $0x60] sm:$0xff] %v1141_v48 }
 0x2ed   :  { %v1143_v49 = vpop.eup %1142 }
 0x2ee   :  { %810 = vst [vmem:[#allocation10 + $0x78] sm:$0xff] %v1143_v49 }
 0x2ef   :  { %v1145_v50 = vpop.eup %1144 }
 0x2f0   :  { %808 = vst [vmem:[#allocation10 + $0x68] sm:$0xff] %v1145_v50 }
 0x2f1   :  { %1237 = shalt.err (!%p1234_p10)
}
 0x2f2   :  { %s1261_s25 = smov 128   ;;  %s1262_s26 = smov 8  }
 0x2f3   :  { %822 = dma.vmem_to_hbm [thread:$0]  %s817_s23, 2048, %s1370_s7, [#allocation4], %s1261_s25, %s1261_s25, %s1262_s26  }
 0x2f4   :  { %1252 = dma.done.wait [#allocation4], 2048  }
 0x2f5   :  { %1253 = vsyncadd [#allocation4], 4294965248 }
 0x2f6   :  { %826 = vsyncpa [#allocation3], 1 }
 0x2f7   :  { %827 = vsyncpa [#allocation6], 1 }
 0x2f8   :  { %828 = vsyncpa [#allocation9], 1 }
 0x2f9   :  { %829 = vsyncpa [#allocation4], 1 }

</bundles_post_ra>
